<compile_context>
chip_gen: v7x
topology: tpu7x:2x2x1
jax: 0.10.0
libtpu: 0.0.40
codegen_flags: <defaults>
</compile_context>

<pallas_src>
import jax
import jax.numpy as jnp
from jax.experimental import pallas as pl
from jax.experimental.pallas import tpu as pltpu


OBS_DIM = 8        # env.observation_space.shape[0] for LunarLander-v2
N_ACTIONS = 4      # env.action_space.n for LunarLander-v2
H1, H2, H3 = 128, 64, 128
TB_MAX = 2048      # batch-tile cap (multiple of 16); keeps per-step overhead <5%


def _mlp_kernel(x_ref,
                w1_ref, b1_ref,
                w2_ref, b2_ref,
                w3_ref, b3_ref,
                w4_ref, b4_ref,
                o_ref):
    # bf16 matmul operands -> f32 MXU accumulation; bias + ReLU in f32 (VPU).
    x = x_ref[...].astype(jnp.bfloat16)                                 # (TB, 8) bf16

    h = jnp.dot(x, w1_ref[...], preferred_element_type=jnp.float32)    # (TB, 128) f32
    h = jnp.maximum(h + b1_ref[...], 0.0)

    h = jnp.dot(h.astype(jnp.bfloat16), w2_ref[...],
                preferred_element_type=jnp.float32)                    # (TB, 64) f32
    h = jnp.maximum(h + b2_ref[...], 0.0)

    h = jnp.dot(h.astype(jnp.bfloat16), w3_ref[...],
                preferred_element_type=jnp.float32)                    # (TB, 128) f32
    h = jnp.maximum(h + b3_ref[...], 0.0)

    q = jnp.dot(h.astype(jnp.bfloat16), w4_ref[...],
                preferred_element_type=jnp.float32)                    # (TB, 4) f32
    o_ref[...] = (q + b4_ref[...]).astype(o_ref.dtype)


def _round_up(v, m):
    return -(-v // m) * m


def prepare_params(params):
    """One-time conversion to inference dtypes: bf16 weights, f32 biases.

    Call once and reuse the result; avoids per-call casts in the hot loop."""
    w1, b1, w2, b2, w3, b3, w4, b4 = params
    bf = jnp.bfloat16
    f32 = jnp.float32
    return (w1.astype(bf), b1.astype(f32),
            w2.astype(bf), b2.astype(f32),
            w3.astype(bf), b3.astype(f32),
            w4.astype(bf), b4.astype(f32))


def q_nn_forward(x, params, *, tb=None):
    """Forward pass of q_NN.

    x: (batch, OBS_DIM) float32
    params: output of prepare_params() (bf16 weights, f32 biases)
    returns: (batch, N_ACTIONS) float32
    """
    w1, b1, w2, b2, w3, b3, w4, b4 = params
    batch = x.shape[0]

    if tb is None:
        # >= 2 tiles for mid/large batches (v7x: shard batch over both TCs),
        # multiple of 16 (bf16 row packing), capped at TB_MAX, floor 16.
        tb = min(TB_MAX, max(16, _round_up(pl.cdiv(batch, 2), 16)))
    else:
        tb = max(16, _round_up(tb, 16))

    n_tiles = pl.cdiv(batch, tb)
    padded_batch = n_tiles * tb
    if padded_batch != batch:
        x = jnp.pad(x, ((0, padded_batch - batch), (0, 0)))

    # Weights/biases: one full block, constant index map -> VMEM-resident
    # across all batch grid steps (no re-DMA).
    const2d = lambda a: pl.BlockSpec(a.shape, lambda i: (0, 0))

    weight_elems = OBS_DIM * H1 + H1 * H2 + H2 * H3 + H3 * N_ACTIONS
    cost = pl.CostEstimate(
        flops=2 * padded_batch * weight_elems,
        transcendentals=0,
        bytes_accessed=(padded_batch * OBS_DIM * 4        # x (f32)
                        + padded_batch * N_ACTIONS * 4    # out (f32)
                        + 2 * weight_elems                # bf16 weights
                        + 4 * (H1 + H2 + H3 + N_ACTIONS)  # f32 biases
                        ))

    out = pl.pallas_call(
        _mlp_kernel,
        out_shape=jax.ShapeDtypeStruct((padded_batch, N_ACTIONS), jnp.float32),
        grid=(n_tiles,),
        in_specs=[pl.BlockSpec((tb, OBS_DIM), lambda i: (i, 0)),
                  const2d(w1), const2d(b1),
                  const2d(w2), const2d(b2),
                  const2d(w3), const2d(b3),
                  const2d(w4), const2d(b4)],
        out_specs=pl.BlockSpec((tb, N_ACTIONS), lambda i: (i, 0)),
        compiler_params=pltpu.CompilerParams(
            dimension_semantics=("parallel",)),
        cost_estimate=cost,
    )(x, w1, b1, w2, b2, w3, b3, w4, b4)

    if padded_batch != batch:
        out = out[:batch]
    return out


def init_params(key):
    """Deterministic synthetic f32 parameters matching the PyTorch module's shapes."""
    dims = [(OBS_DIM, H1), (H1, H2), (H2, H3), (H3, N_ACTIONS)]
    params = []
    for fan_in, fan_out in dims:
        kw, kb, key = jax.random.split(key, 3)
        bound = 1.0 / jnp.sqrt(fan_in)  # mimic torch.nn.Linear default init
        w = jax.random.uniform(kw, (fan_in, fan_out), jnp.float32, -bound, bound)
        b = jax.random.uniform(kb, (1, fan_out), jnp.float32, -bound, bound)
        params += [w, b]
    return tuple(params)


def reference_forward(x, params):
    """Pure-JAX reference mirroring the kernel math (bf16 operands, f32 accum)."""
    w1, b1, w2, b2, w3, b3, w4, b4 = params
    bf = jnp.bfloat16
    h = jnp.maximum(jnp.dot(x.astype(bf), w1.astype(bf),
                            preferred_element_type=jnp.float32) + b1, 0.0)
    h = jnp.maximum(jnp.dot(h.astype(bf), w2.astype(bf),
                            preferred_element_type=jnp.float32) + b2, 0.0)
    h = jnp.maximum(jnp.dot(h.astype(bf), w3.astype(bf),
                            preferred_element_type=jnp.float32) + b3, 0.0)
    return jnp.dot(h.astype(bf), w4.astype(bf),
                   preferred_element_type=jnp.float32) + b4


if __name__ == "__main__":
    key = jax.random.PRNGKey(0)
    kx, kp = jax.random.split(key)

    batch = 2
    x = jax.random.normal(kx, (batch, OBS_DIM), jnp.float32)
    params = init_params(kp)
    inf_params = prepare_params(params)   # one-time cast, outside the hot loop

    fwd = jax.jit(q_nn_forward)
    out = jax.block_until_ready(fwd(x, inf_params))

    ref = reference_forward(x, params)
    assert out.shape == (batch, N_ACTIONS)
    assert jnp.allclose(out, ref, atol=5e-3, rtol=5e-3), "mismatch vs JAX reference"

    print("KERNEL_OK")
</pallas_src>

<mosaic_0001>
module attributes {stable_mosaic.version = 11 : i64} {
  func.func @_mlp_kernel(%arg0: i32, %arg1: memref<16x8xf32, #tpu.memory_space<vmem>>, %arg2: memref<8x128xbf16, #tpu.memory_space<vmem>>, %arg3: memref<1x128xf32, #tpu.memory_space<vmem>>, %arg4: memref<128x64xbf16, #tpu.memory_space<vmem>>, %arg5: memref<1x64xf32, #tpu.memory_space<vmem>>, %arg6: memref<64x128xbf16, #tpu.memory_space<vmem>>, %arg7: memref<1x128xf32, #tpu.memory_space<vmem>>, %arg8: memref<128x4xbf16, #tpu.memory_space<vmem>>, %arg9: memref<1x4xf32, #tpu.memory_space<vmem>>, %arg10: memref<16x4xf32, #tpu.memory_space<vmem>>) attributes {dimension_semantics = [#tpu.dimension_semantics<parallel>], iteration_bounds = array<i64: 1>, scalar_prefetch = 0 : i64, scratch_operands = 0 : i64, tpu.core_type = #tpu.core_type<tc>, window_params = [{transform_indices = @transform_0, window_bounds = array<i64: 16, 8>}, {pipeline_mode = #tpu.pipeline_mode<synchronous>, transform_indices = @transform_1, window_bounds = array<i64: 8, 128>}, {pipeline_mode = #tpu.pipeline_mode<synchronous>, transform_indices = @transform_2, window_bounds = array<i64: 1, 128>}, {pipeline_mode = #tpu.pipeline_mode<synchronous>, transform_indices = @transform_3, window_bounds = array<i64: 128, 64>}, {pipeline_mode = #tpu.pipeline_mode<synchronous>, transform_indices = @transform_4, window_bounds = array<i64: 1, 64>}, {pipeline_mode = #tpu.pipeline_mode<synchronous>, transform_indices = @transform_5, window_bounds = array<i64: 64, 128>}, {pipeline_mode = #tpu.pipeline_mode<synchronous>, transform_indices = @transform_6, window_bounds = array<i64: 1, 128>}, {pipeline_mode = #tpu.pipeline_mode<synchronous>, transform_indices = @transform_7, window_bounds = array<i64: 128, 4>}, {pipeline_mode = #tpu.pipeline_mode<synchronous>, transform_indices = @transform_8, window_bounds = array<i64: 1, 4>}, {transform_indices = @transform_9, window_bounds = array<i64: 16, 4>}]} {
    %c0 = arith.constant 0 : index
    %c0_0 = arith.constant 0 : index
    %0 = vector.load %arg1[%c0, %c0_0] : memref<16x8xf32, #tpu.memory_space<vmem>>, vector<16x8xf32>
    %1 = arith.truncf %0 : vector<16x8xf32> to vector<16x8xbf16>
    %c0_1 = arith.constant 0 : index
    %c0_2 = arith.constant 0 : index
    %2 = vector.load %arg2[%c0_1, %c0_2] : memref<8x128xbf16, #tpu.memory_space<vmem>>, vector<8x128xbf16>
    %cst = arith.constant dense<0.000000e+00> : vector<16x128xf32>
    %3 = tpu.matmul %1, %2, %cst {dimension_numbers = #tpu.dot_dimension_numbers<[1], [0], [0], [1], [0, 0, 1, 1], [], []>} : vector<16x8xbf16>, vector<8x128xbf16>, vector<16x128xf32> -> vector<16x128xf32>
    %c0_3 = arith.constant 0 : index
    %c0_4 = arith.constant 0 : index
    %4 = vector.load %arg3[%c0_3, %c0_4] : memref<1x128xf32, #tpu.memory_space<vmem>>, vector<1x128xf32>
    %5 = vector.broadcast %4 : vector<1x128xf32> to vector<16x128xf32>
    %6 = arith.addf %3, %5 : vector<16x128xf32>
    %cst_5 = arith.constant 0.000000e+00 : f32
    %7 = vector.broadcast %cst_5 : f32 to vector<16x128xf32>
    %8 = arith.maximumf %6, %7 : vector<16x128xf32>
    %9 = arith.truncf %8 : vector<16x128xf32> to vector<16x128xbf16>
    %c0_6 = arith.constant 0 : index
    %c0_7 = arith.constant 0 : index
    %10 = vector.load %arg4[%c0_6, %c0_7] : memref<128x64xbf16, #tpu.memory_space<vmem>>, vector<128x64xbf16>
    %cst_8 = arith.constant dense<0.000000e+00> : vector<16x64xf32>
    %11 = tpu.matmul %9, %10, %cst_8 {dimension_numbers = #tpu.dot_dimension_numbers<[1], [0], [0], [1], [0, 0, 1, 1], [], []>} : vector<16x128xbf16>, vector<128x64xbf16>, vector<16x64xf32> -> vector<16x64xf32>
    %c0_9 = arith.constant 0 : index
    %c0_10 = arith.constant 0 : index
    %12 = vector.load %arg5[%c0_9, %c0_10] : memref<1x64xf32, #tpu.memory_space<vmem>>, vector<1x64xf32>
    %13 = vector.broadcast %12 : vector<1x64xf32> to vector<16x64xf32>
    %14 = arith.addf %11, %13 : vector<16x64xf32>
    %cst_11 = arith.constant 0.000000e+00 : f32
    %15 = vector.broadcast %cst_11 : f32 to vector<16x64xf32>
    %16 = arith.maximumf %14, %15 : vector<16x64xf32>
    %17 = arith.truncf %16 : vector<16x64xf32> to vector<16x64xbf16>
    %c0_12 = arith.constant 0 : index
    %c0_13 = arith.constant 0 : index
    %18 = vector.load %arg6[%c0_12, %c0_13] : memref<64x128xbf16, #tpu.memory_space<vmem>>, vector<64x128xbf16>
    %cst_14 = arith.constant dense<0.000000e+00> : vector<16x128xf32>
    %19 = tpu.matmul %17, %18, %cst_14 {dimension_numbers = #tpu.dot_dimension_numbers<[1], [0], [0], [1], [0, 0, 1, 1], [], []>} : vector<16x64xbf16>, vector<64x128xbf16>, vector<16x128xf32> -> vector<16x128xf32>
    %c0_15 = arith.constant 0 : index
    %c0_16 = arith.constant 0 : index
    %20 = vector.load %arg7[%c0_15, %c0_16] : memref<1x128xf32, #tpu.memory_space<vmem>>, vector<1x128xf32>
    %21 = vector.broadcast %20 : vector<1x128xf32> to vector<16x128xf32>
    %22 = arith.addf %19, %21 : vector<16x128xf32>
    %cst_17 = arith.constant 0.000000e+00 : f32
    %23 = vector.broadcast %cst_17 : f32 to vector<16x128xf32>
    %24 = arith.maximumf %22, %23 : vector<16x128xf32>
    %25 = arith.truncf %24 : vector<16x128xf32> to vector<16x128xbf16>
    %c0_18 = arith.constant 0 : index
    %c0_19 = arith.constant 0 : index
    %26 = vector.load %arg8[%c0_18, %c0_19] : memref<128x4xbf16, #tpu.memory_space<vmem>>, vector<128x4xbf16>
    %cst_20 = arith.constant dense<0.000000e+00> : vector<16x4xf32>
    %27 = tpu.matmul %25, %26, %cst_20 {dimension_numbers = #tpu.dot_dimension_numbers<[1], [0], [0], [1], [0, 0, 1, 1], [], []>} : vector<16x128xbf16>, vector<128x4xbf16>, vector<16x4xf32> -> vector<16x4xf32>
    %c0_21 = arith.constant 0 : index
    %c0_22 = arith.constant 0 : index
    %28 = vector.load %arg9[%c0_21, %c0_22] : memref<1x4xf32, #tpu.memory_space<vmem>>, vector<1x4xf32>
    %29 = vector.broadcast %28 : vector<1x4xf32> to vector<16x4xf32>
    %30 = arith.addf %27, %29 : vector<16x4xf32>
    %c0_23 = arith.constant 0 : index
    %c0_24 = arith.constant 0 : index
    %31 = vector.load %arg10[%c0_23, %c0_24] : memref<16x4xf32, #tpu.memory_space<vmem>>, vector<16x4xf32>
    tpu.vector_store %arg10[%c0_23, %c0_24], %30 {strides = array<i32>} : memref<16x4xf32, #tpu.memory_space<vmem>>, vector<16x4xf32>,
    return
  }
  func.func @transform_0(%arg0: i32) -> (i32, i32) {
    %c0_i32 = arith.constant 0 : i32
    %c0_i32_0 = arith.constant 0 : i32
    return %arg0, %c0_i32 : i32, i32
  }
  func.func @transform_1(%arg0: i32) -> (i32, i32) {
    %c0_i32 = arith.constant 0 : i32
    %c0_i32_0 = arith.constant 0 : i32
    %c0_i32_1 = arith.constant 0 : i32
    return %c0_i32, %c0_i32_0 : i32, i32
  }
  func.func @transform_2(%arg0: i32) -> (i32, i32) {
    %c0_i32 = arith.constant 0 : i32
    %c0_i32_0 = arith.constant 0 : i32
    %c0_i32_1 = arith.constant 0 : i32
    return %c0_i32, %c0_i32_0 : i32, i32
  }
  func.func @transform_3(%arg0: i32) -> (i32, i32) {
    %c0_i32 = arith.constant 0 : i32
    %c0_i32_0 = arith.constant 0 : i32
    %c0_i32_1 = arith.constant 0 : i32
    return %c0_i32, %c0_i32_0 : i32, i32
  }
  func.func @transform_4(%arg0: i32) -> (i32, i32) {
    %c0_i32 = arith.constant 0 : i32
    %c0_i32_0 = arith.constant 0 : i32
    %c0_i32_1 = arith.constant 0 : i32
    return %c0_i32, %c0_i32_0 : i32, i32
  }
  func.func @transform_5(%arg0: i32) -> (i32, i32) {
    %c0_i32 = arith.constant 0 : i32
    %c0_i32_0 = arith.constant 0 : i32
    %c0_i32_1 = arith.constant 0 : i32
    return %c0_i32, %c0_i32_0 : i32, i32
  }
  func.func @transform_6(%arg0: i32) -> (i32, i32) {
    %c0_i32 = arith.constant 0 : i32
    %c0_i32_0 = arith.constant 0 : i32
    %c0_i32_1 = arith.constant 0 : i32
    return %c0_i32, %c0_i32_0 : i32, i32
  }
  func.func @transform_7(%arg0: i32) -> (i32, i32) {
    %c0_i32 = arith.constant 0 : i32
    %c0_i32_0 = arith.constant 0 : i32
    %c0_i32_1 = arith.constant 0 : i32
    return %c0_i32, %c0_i32_0 : i32, i32
  }
  func.func @transform_8(%arg0: i32) -> (i32, i32) {
    %c0_i32 = arith.constant 0 : i32
    %c0_i32_0 = arith.constant 0 : i32
    %c0_i32_1 = arith.constant 0 : i32
    return %c0_i32, %c0_i32_0 : i32, i32
  }
  func.func @transform_9(%arg0: i32) -> (i32, i32) {
    %c0_i32 = arith.constant 0 : i32
    %c0_i32_0 = arith.constant 0 : i32
    return %arg0, %c0_i32 : i32, i32
  }
}

</mosaic_0001>

<bundles_post_ra>
// kernel: q_nn_forward.1
= control target key start
LH: loop header
LB: loop body
LE: loop exit
PB: predicated region body
PF: predicated region fallthrough
CT: control target
= control target key end

     0   :  { %vm48_vm0 = vcmask 1043456   ;;  %v548_v0 = vmov 0.0   ;;  %vm549_vm1 = vmmov 0   ;;  %vm44_vm2 = vcmask 64512   ;;  %s716_s1 = inlined_call_operand.vmem [shape: bf16[8,128], index: 1, kind: input, shape index: {}]   ;;  %s717_s0 = inlined_call_operand.vmem [shape: f32[16,8], index: 0, kind: input, shape index: {}]   ;;  %s718_s3 = inlined_call_operand.vmem [shape: bf16[128,64], index: 3, kind: input, shape index: {}]   ;;  %s719_s5 = inlined_call_operand.vmem [shape: bf16[64,128], index: 5, kind: input, shape index: {}]   ;;  %s720_s2 = inlined_call_operand.vmem [shape: f32[1,128], index: 2, kind: input, shape index: {}]   ;;  %s721_s7 = inlined_call_operand.vmem [shape: bf16[128,4], index: 7, kind: input, shape index: {}]   ;;  %s722_s4 = inlined_call_operand.vmem [shape: f32[1,64], index: 4, kind: input, shape index: {}]   ;;  %s723_s6 = inlined_call_operand.vmem [shape: f32[1,128], index: 6, kind: input, shape index: {}]   ;;  %s724_s8 = inlined_call_operand.vmem [shape: f32[1,4], index: 8, kind: input, shape index: {}]   ;;  %s725_s9 = inlined_call_operand.vmem [shape: f32[16,4], index: 9, kind: output, shape index: {}]  }
   0x1   :  { %468 = vmatprep.subr.bf16.mxu1 %v548_v0  ;;  %v36_v1 = vld [vmem:[%s716_s1] sm:$0xf]  ;;  %470 = vmatprep.mubr.msk.bf16.mxu1 %vm549_vm1, %v548_v0  ;;  %v34_v3 = vld [vmem:[%s717_s0 + $0x8] sm:$0xff]  ;;  %v530_v8 = vld [vmem:[%s718_s3 + $0x10] sm:$0xff]   ;;  %vm250_vm3 = vcmask 523264   ;;  %vm410_vm4 = vcmask 31744  }
   0x2   :  { %v33_v2 = vld [vmem:[%s717_s0] sm:$0xff]  ;;  %v50_v4 = vsel %vm48_vm0, %v36_v1, 0  ;;  %494 = vmatprep.subr.bf16.mxu0 %v548_v0  ;;  %502 = vmatprep.mubr.msk.bf16.mxu0 %vm549_vm1, %v548_v0  ;;  %v529_v7 = vld [vmem:[%s718_s3 + $0x8] sm:$0xff]   ;;  %v531_v9 = vld [vmem:[%s718_s3 + $0x18] sm:$0xff]  }
   0x3   :  { %v35_v5 = vpack.c.bf16 %v34_v3, %v33_v2  ;;  %469 = vmatpush3.bf16.msra.mxu1 %v50_v4  ;;  %v528_v6 = vld [vmem:[%s718_s3] sm:$0xff]   ;;  %v533_v11 = vld [vmem:[%s718_s3 + $0x28] sm:$0xff]   ;;  %v534_v12 = vld [vmem:[%s718_s3 + $0x30] sm:$0xff]  }
   0x4   :  { %474 = vmatprep.subr.bf16.mxu1 %v548_v0  ;;  %v532_v10 = vld [vmem:[%s718_s3 + $0x20] sm:$0xff]   ;;  %v535_v13 = vld [vmem:[%s718_s3 + $0x38] sm:$0xff]   ;;  %v537_v15 = vld [vmem:[%s719_s5 + $0x8] sm:$0xff]  }
   0x5   :  { %v536_v14 = vld [vmem:[%s719_s5] sm:$0xff]   ;;  %v538_v26 = vld [vmem:[%s719_s5 + $0x10] sm:$0xff]   ;;  %v539_v27 = vld [vmem:[%s719_s5 + $0x18] sm:$0xff]  }
   0x6   :  { %471 = vmatmul.mubr.msk.bf16.vlgmr.msra.gmra.mrb[0].mxu1 %vm44_vm2, %v35_v5  ;;  %495 = vmatpush3.bf16.msra.mxu0 %v536_v14  ;;  %v417_v16 = vld [vmem:[%s720_s2] ss:$0 sm:$0xff]  ;;  %v541_v39 = vld [vmem:[%s721_s7 + $0x8] sm:$0xff]   ;;  %v542_v40 = vld [vmem:[%s721_s7 + $0x10] sm:$0xff]  }
   0x7   :  { %475 = vmatpush3.bf16.msra.mxu1 %v528_v6  ;;  %490 = vmatprep.mubr.msk.bf16.mxu1 %vm549_vm1, %v548_v0  ;;  %v419_v28 = vld [vmem:[%s722_s4] ss:$0 sm:$0xff]  ;;  %v543_v41 = vld [vmem:[%s721_s7 + $0x18] sm:$0xff]   ;;  %v545_v43 = vld [vmem:[%s721_s7 + $0x28] sm:$0xff]  }
   0x8   :  { %476 = vmatprep.subr.bf16.mxu1 %v548_v0  ;;  %496 = vmatprep.subr.bf16.mxu0 %v548_v0  ;;  %v540_v37 = vld [vmem:[%s721_s7] sm:$0xff]   ;;  %v546_v44 = vld [vmem:[%s721_s7 + $0x30] sm:$0xff]   ;;  %v547_v45 = vld [vmem:[%s721_s7 + $0x38] sm:$0xff]  }
   0x9   :  { %v544_v42 = vld [vmem:[%s721_s7 + $0x20] sm:$0xff]  }
   0xa   :  { %497 = vmatpush3.bf16.msra.mxu0 %v537_v15  ;;  %v428_v46 = vld [vmem:[%s723_s6] ss:$0 sm:$0xff] }
   0xb   :  { %477 = vmatpush3.bf16.msra.mxu1 %v529_v7  ;;  %498 = vmatprep.subr.bf16.mxu0 %v548_v0  ;;  %v434_v56 = vld [vmem:[%s724_s8] ss:$0 sm:$0xff] }
   0xc   :  { %478 = vmatprep.subr.bf16.mxu1 %v548_v0 }
   0xe   :  { %499 = vmatpush3.bf16.msra.mxu0 %v538_v26 }
   0xf   :  { %479 = vmatpush3.bf16.msra.mxu1 %v530_v8  ;;  %500 = vmatprep.subr.bf16.mxu0 %v548_v0 }
  0x10   :  { %480 = vmatprep.subr.bf16.mxu1 %v548_v0 }
  0x12   :  { %501 = vmatpush3.bf16.msra.mxu0 %v539_v27 }
  0x13   :  { %481 = vmatpush3.bf16.msra.mxu1 %v531_v9  ;;  %506 = vmatprep.subr.bf16.mxu0 %v548_v0 }
  0x14   :  { %482 = vmatprep.subr.bf16.mxu1 %v548_v0 }
  0x17   :  { %483 = vmatpush3.bf16.msra.mxu1 %v532_v10 }
  0x18   :  { %484 = vmatprep.subr.bf16.mxu1 %v548_v0 }
  0x1b   :  { %485 = vmatpush3.bf16.msra.mxu1 %v533_v11 }
  0x1c   :  { %486 = vmatprep.subr.bf16.mxu1 %v548_v0 }
  0x1f   :  { %487 = vmatpush3.bf16.msra.mxu1 %v534_v12 }
  0x20   :  { %488 = vmatprep.subr.bf16.mxu1 %v548_v0 }
  0x23   :  { %489 = vmatpush3.bf16.msra.mxu1 %v535_v13 }
  0xd9   :  { %v86_v17 = vpop.f32.mrb[0].mxu1 }
  0xda   :  { %v87_v18 = vadd.f32 %v417_v16, %v86_v17  ;;  %v472_v19 = vpop.f32.mrb[1].mxu1 }
  0xdb   :  { %v89_v20 = vpop.f32.mrb[2].mxu1 }
  0xdc   :  { %v90_v21 = vadd.f32 %v417_v16, %v89_v20  ;;  %v473_v22 = vpop.f32.mrb[3].mxu1  ;;  %v93_v23 = vmax.f32 %v87_v18, 0.0 }
  0xde   :  { %v94_v24 = vmax.f32 %v90_v21, 0.0 }
  0xe0   :  { %v95_v25 = vpack.c.bf16 %v94_v24, %v93_v23 }
  0xe2   :  { %491 = vmatmul.mubr.bf16.vlgmr.msra.gmra.mrb[4].mxu1 %v95_v25 }
 0x1b5   :  { %v201_v29 = vpop.f32.mrb[4].mxu1 }
 0x1b6   :  { %v202_v30 = vadd.f32 %v419_v28, %v201_v29  ;;  %v492_v31 = vpop.f32.mrb[5].mxu1 }
 0x1b7   :  { %v204_v32 = vpop.f32.mrb[6].mxu1 }
 0x1b8   :  { %v205_v33 = vadd.f32 %v419_v28, %v204_v32  ;;  %v493_v34 = vpop.f32.mrb[7].mxu1  ;;  %v208_v35 = vmax.f32 %v202_v30, 0.0 }
 0x1ba   :  { %v209_v36 = vmax.f32 %v205_v33, 0.0 }
 0x1bc   :  { %v210_v38 = vpack.c.bf16 %v209_v36, %v208_v35 }
 0x1be   :  { %503 = vmatmul.mubr.msk.bf16.vlgmr.msra.gmra.mrb[0].mxu0 %vm250_vm3, %v210_v38 }
 0x1bf   :  { %507 = vmatpush3.bf16.msra.mxu0 %v540_v37  ;;  %522 = vmatprep.mubr.msk.bf16.mxu0 %vm549_vm1, %v548_v0 }
 0x1c0   :  { %508 = vmatprep.subr.bf16.mxu0 %v548_v0 }
 0x1c3   :  { %509 = vmatpush3.bf16.msra.mxu0 %v541_v39 }
 0x1c4   :  { %510 = vmatprep.subr.bf16.mxu0 %v548_v0 }
 0x1c7   :  { %511 = vmatpush3.bf16.msra.mxu0 %v542_v40 }
 0x1c8   :  { %512 = vmatprep.subr.bf16.mxu0 %v548_v0 }
 0x1cb   :  { %513 = vmatpush3.bf16.msra.mxu0 %v543_v41 }
 0x1cc   :  { %514 = vmatprep.subr.bf16.mxu0 %v548_v0 }
 0x1cf   :  { %515 = vmatpush3.bf16.msra.mxu0 %v544_v42 }
 0x1d0   :  { %516 = vmatprep.subr.bf16.mxu0 %v548_v0 }
 0x1d3   :  { %517 = vmatpush3.bf16.msra.mxu0 %v545_v43 }
 0x1d4   :  { %518 = vmatprep.subr.bf16.mxu0 %v548_v0 }
 0x1d7   :  { %519 = vmatpush3.bf16.msra.mxu0 %v546_v44 }
 0x1d8   :  { %520 = vmatprep.subr.bf16.mxu0 %v548_v0 }
 0x1db   :  { %521 = vmatpush3.bf16.msra.mxu0 %v547_v45 }
 0x291   :  { %v288_v47 = vpop.f32.mrb[0].mxu0 }
 0x292   :  { %v289_v48 = vadd.f32 %v428_v46, %v288_v47  ;;  %v504_v49 = vpop.f32.mrb[1].mxu0 }
 0x293   :  { %v291_v50 = vpop.f32.mrb[2].mxu0 }
 0x294   :  { %v292_v51 = vadd.f32 %v428_v46, %v291_v50  ;;  %v505_v52 = vpop.f32.mrb[3].mxu0  ;;  %v295_v53 = vmax.f32 %v289_v48, 0.0 }
 0x296   :  { %v296_v54 = vmax.f32 %v292_v51, 0.0 }
 0x298   :  { %v297_v55 = vpack.c.bf16 %v296_v54, %v295_v53 }
 0x29a   :  { %523 = vmatmul.mubr.bf16.vlgmr.msra.gmra.mrb[4].mxu0 %v297_v55 }
 0x36d   :  { %v403_v57 = vpop.f32.mrb[4].mxu0 }
 0x36e   :  { %v404_v58 = vadd.f32 %v434_v56, %v403_v57  ;;  %v524_v59 = vpop.f32.mrb[5].mxu0 }
 0x36f   :  { %v406_v60 = vpop.f32.mrb[6].mxu0 }
 0x370   :  { %411 = vst.msk [vmem:[%s725_s9] sm:$0xff] %vm410_vm4, %v404_v58  ;;  %v407_v61 = vadd.f32 %v434_v56, %v406_v60  ;;  %v525_v62 = vpop.f32.mrb[7].mxu0 }
 0x372   :  { %412 = vst.msk [vmem:[%s725_s9 + $0x8] sm:$0xff] %vm410_vm4, %v407_v61 }

</bundles_post_ra>
